<compile_context>
chip_gen: v6e
topology: v6e:2x2x1
jax: 0.10.0
libtpu: 0.0.40
codegen_flags: <defaults>
</compile_context>

<pallas_src>
from collections import OrderedDict
from functools import partial

import jax
import jax.numpy as jnp
from jax.experimental import pallas as pl
from jax.experimental.pallas import tpu as pltpu

_LANE = 128      # vreg lane width (last dim)
_SUBLANE = 8     # vreg sublane width (second-to-last dim, f32)

# VMEM budgets (bytes): resident weight panel + pipelined tiles stay well under
# v7x's 64 MiB per-TensorCore VMEM (v5e/v6e have 128 MiB).
_MAX_RESIDENT_WEIGHT_BYTES = 12 * 1024 * 1024
_TILE_BUDGET_BYTES = 12 * 1024 * 1024
_MAX_BATCH_TILE = 512

_BUFFERED_HINTS_OK = True  # flipped off if this jax build rejects pipeline_mode


def _round_up(n, m):
    return ((n + m - 1) // m) * m


def _round_down(n, m):
    return (n // m) * m


def _spec(shape, index_map, buffer_count=None):
    """BlockSpec with an optional pipeline-depth hint (pl.Buffered)."""
    if buffer_count is not None:
        try:
            return pl.BlockSpec(shape, index_map,
                                pipeline_mode=pl.Buffered(buffer_count))
        except (TypeError, AttributeError):
            pass  # hint unsupported on this jax build -> default buffering
    return pl.BlockSpec(shape, index_map)


def _affine_kernel(x_ref, w_ref, b_ref, o_ref, acc_ref, *, mode):
    """out = epilogue(x @ W + b); epilogue chosen statically by `mode`."""
    k = pl.program_id(1)

    @pl.when(k == 0)
    def _():
        acc_ref[...] = jnp.zeros_like(acc_ref)

    acc_ref[...] += jnp.dot(x_ref[...], w_ref[...],
                            preferred_element_type=jnp.float32)

    @pl.when(k == pl.num_programs(1) - 1)
    def _():
        y = acc_ref[...] + b_ref[...]
        if mode == 1:        # linear + relu
            y = jnp.maximum(y, 0.0)
        elif mode == 2:      # 0.5 * linear
            y = y * 0.5
        o_ref[...] = y.astype(o_ref.dtype)


@partial(jax.jit,
         static_argnames=("mode", "out_features", "tk", "buffered_hints"))
def _fused_affine(x, w_pad, b_pad, *, mode, out_features, tk, buffered_hints):
    B, H = x.shape
    Hp, Op = w_pad.shape          # Op is a multiple of 128; Hp is n_k * tk
    n_k = Hp // tk

    xi = x.dtype.itemsize
    wi = w_pad.dtype.itemsize

    # K padding of x only happens when the weight had to be K-tiled (huge H);
    # the common case reads x straight from HBM with no extra copy.
    if Hp != H:
        x = jnp.pad(x, ((0, 0), (0, Hp - H)))

    # Batch tile: as large as the VMEM tile budget allows (fewer grid steps ->
    # closer to HBM roofline); partial last block is masked by Pallas.
    def _tile_bytes(tm):
        # 2x-buffered x tile + 2x-buffered out tile + f32 accumulator scratch
        return tm * (2 * tk * xi + 2 * Op * xi + Op * 4)

    tm = min(_MAX_BATCH_TILE, _round_up(B, _SUBLANE))
    while tm > _SUBLANE and _tile_bytes(tm) > _TILE_BUDGET_BYTES:
        tm = max(_SUBLANE, _round_up(tm // 2, _SUBLANE))

    grid = (pl.cdiv(B, tm), n_k)

    # Constant index_map operands need only a single buffer.
    w_buffers = 1 if (buffered_hints and n_k == 1) else None
    b_buffers = 1 if buffered_hints else None

    needed = (_tile_bytes(tm)
              + (1 if w_buffers == 1 else 2) * tk * Op * wi
              + (1 if b_buffers == 1 else 2) * Op * b_pad.dtype.itemsize)
    vmem_limit = int(min(56 * 2 ** 20,
                         max(needed * 5 // 4 + (1 << 20), 8 * 2 ** 20)))

    out_pad = pl.pallas_call(
        partial(_affine_kernel, mode=mode),
        out_shape=jax.ShapeDtypeStruct((B, Op), x.dtype),
        grid=grid,
        in_specs=[
            pl.BlockSpec((tm, tk), lambda i, k: (i, k)),        # x batch tile
            _spec((tk, Op), lambda i, k: (k, 0), w_buffers),    # weight panel
            _spec((1, Op), lambda i, k: (0, 0), b_buffers),     # bias row
        ],
        out_specs=pl.BlockSpec((tm, Op), lambda i, k: (i, 0)),
        scratch_shapes=[pltpu.VMEM((tm, Op), jnp.float32)],
        compiler_params=pltpu.CompilerParams(
            dimension_semantics=("parallel", "arbitrary"),
            vmem_limit_bytes=vmem_limit,
        ),
        cost_estimate=pl.CostEstimate(
            flops=2 * B * Hp * Op,
            transcendentals=0,
            bytes_accessed=xi * B * Hp + wi * Hp * Op + wi * Op + xi * B * Op,
        ),
    )(x, w_pad, b_pad)

    if Op != out_features:
        return out_pad[:, :out_features]
    return out_pad


class _PallasAffineModule:
    """Stand-in for a torch.nn sub-module stored in the ModuleDict.

    mode: 0 = linear, 1 = linear+relu, 2 = 0.5*linear (static epilogue).
    Weights are padded only along N (lane-dense stores).  K keeps its natural
    size unless the weight panel exceeds the resident-VMEM budget, in which
    case K is tiled in 128-lane multiples (zero-padded) with an f32 accumulator.
    """

    def __init__(self, mode, w, b,
                 max_resident_weight_bytes=_MAX_RESIDENT_WEIGHT_BYTES):
        H, O = w.shape
        Op = _round_up(O, _LANE)
        wi = jnp.dtype(w.dtype).itemsize

        if H * Op * wi <= max_resident_weight_bytes:
            tk, Hp = H, H          # whole-K resident (common case, no K pad)
        else:
            tk = max(_LANE,
                     _round_down(max_resident_weight_bytes // (Op * wi), _LANE))
            Hp = _round_up(H, tk)  # K-tiled for very large hidden sizes

        self.mode = int(mode)
        self.out_features = O
        self.tk = tk
        self.w_pad = jnp.zeros((Hp, Op), w.dtype).at[:H, :O].set(w)
        self.b_pad = jnp.zeros((1, Op), b.dtype).at[:, :O].set(
            jnp.reshape(b, (1, O)))
        # TODO(synk): on v6e/v7x, store W/b in bfloat16 (f32 MXU accumulation)
        # and use 256-wide N tiles for large layers (halves weight bytes).

    def __call__(self, x):
        global _BUFFERED_HINTS_OK
        try:
            return _fused_affine(x, self.w_pad, self.b_pad,
                                 mode=self.mode,
                                 out_features=self.out_features,
                                 tk=self.tk,
                                 buffered_hints=_BUFFERED_HINTS_OK)
        except Exception:
            if not _BUFFERED_HINTS_OK:
                raise
            # pl.Buffered pipeline hints unsupported on this build: retry once
            # with default double-buffering and remember the outcome.
            _BUFFERED_HINTS_OK = False
            return _fused_affine(x, self.w_pad, self.b_pad,
                                 mode=self.mode,
                                 out_features=self.out_features,
                                 tk=self.tk,
                                 buffered_hints=False)


# ----------------------------------------------------------------------------
# _OptionModule equivalent: pure Python dispatch, exactly like the PyTorch
# `if fn(option_input): return self.moddict[fn_name](*other_inputs)`.
# ----------------------------------------------------------------------------
class OptionModule:
    def __init__(self, criteria_dict):
        self.criteria_names = OrderedDict(
            (fn, "option{}".format(i)) for i, fn in enumerate(criteria_dict)
        )
        self.moddict = {
            self.criteria_names[fn]: mod for fn, mod in criteria_dict.items()
        }

    def __call__(self, option_input, *other_inputs):
        for fn, fn_name in self.criteria_names.items():
            if fn(option_input):
                return self.moddict[fn_name](*other_inputs)
        raise RuntimeError(
            "No criteria satisfied for option {}".format(option_input)
        )


def _make_option_module(key, hidden, out):
    keys = jax.random.split(key, 6)
    params = []
    for i in range(3):
        w = (jax.random.normal(keys[2 * i], (hidden, out), jnp.float32)
             / jnp.sqrt(hidden))
        b = 0.01 * jax.random.normal(keys[2 * i + 1], (1, out), jnp.float32)
        params.append((w, b))

    criteria_dict = OrderedDict(
        [
            ((lambda opt: opt < 0), _PallasAffineModule(0, *params[0])),   # linear
            ((lambda opt: opt == 0), _PallasAffineModule(1, *params[1])),  # linear+relu
            ((lambda opt: opt > 0), _PallasAffineModule(2, *params[2])),   # 0.5*linear
        ]
    )
    return OptionModule(criteria_dict), params


if __name__ == "__main__":
    key = jax.random.PRNGKey(0)
    k_param, k_x1, k_x2, k_wk = jax.random.split(key, 4)

    batch, hidden, out = 8, 32, 32
    module, params = _make_option_module(k_param, hidden, out)

    x8 = jax.random.normal(k_x1, (batch, hidden), jnp.float32)
    x6 = jax.random.normal(k_x2, (6, hidden), jnp.float32)   # partial batch block

    # Exercise every dispatch branch (first-match-wins, as in the torch code).
    y_neg = module(-1, x8)    # option0: linear
    y_zero = module(0, x8)    # option1: linear + relu
    y_pos = module(2, x6)     # option2: 0.5 * linear (masked partial block)
    jax.block_until_ready((y_neg, y_zero, y_pos))

    (w0, b0), (w1, b1), (w2, b2) = params
    assert y_neg.shape == (batch, out)
    assert jnp.allclose(y_neg, x8 @ w0 + b0, atol=1e-5)
    assert jnp.allclose(y_zero, jnp.maximum(x8 @ w1 + b1, 0.0), atol=1e-5)
    assert y_pos.shape == (6, out)
    assert jnp.allclose(y_pos, 0.5 * (x6 @ w2 + b2), atol=1e-5)

    # K-tiled path (forced tiny resident-weight budget -> 3 K blocks + K pad).
    Hk, Ok = 288, 32
    wk = jax.random.normal(k_wk, (Hk, Ok), jnp.float32) / jnp.sqrt(Hk)
    bk = jnp.zeros((1, Ok), jnp.float32)
    mod_k = _PallasAffineModule(1, wk, bk, max_resident_weight_bytes=64 * 1024)
    xk = jax.random.normal(k_x1, (10, Hk), jnp.float32)
    yk = mod_k(xk)
    jax.block_until_ready(yk)
    assert yk.shape == (10, Ok)
    assert jnp.allclose(yk, jnp.maximum(xk @ wk + bk, 0.0), atol=1e-4)

    # No criteria satisfied -> RuntimeError, as in the PyTorch module.
    try:
        module(float("nan"), x8)
        raise AssertionError("expected RuntimeError")
    except RuntimeError:
        pass

    print("KERNEL_OK")
</pallas_src>

<mosaic_0001>
module attributes {stable_mosaic.version = 11 : i64} {
  func.func @_affine_kernel(%arg0: i32, %arg1: i32, %arg2: memref<8x32xf32, #tpu.memory_space<vmem>>, %arg3: memref<32x128xf32, #tpu.memory_space<vmem>>, %arg4: memref<1x128xf32, #tpu.memory_space<vmem>>, %arg5: memref<8x128xf32, #tpu.memory_space<vmem>>, %arg6: memref<8x128xf32, #tpu.memory_space<vmem>>) attributes {dimension_semantics = [#tpu.dimension_semantics<parallel>, #tpu.dimension_semantics<arbitrary>], iteration_bounds = array<i64: 1, 1>, scalar_prefetch = 0 : i64, scratch_operands = 1 : i64, tpu.core_type = #tpu.core_type<tc>, window_params = [{transform_indices = @transform_0, window_bounds = array<i64: 8, 32>}, {pipeline_mode = #tpu.pipeline_mode<synchronous>, transform_indices = @transform_1, window_bounds = array<i64: 32, 128>}, {pipeline_mode = #tpu.pipeline_mode<synchronous>, transform_indices = @transform_2, window_bounds = array<i64: 1, 128>}, {transform_indices = @transform_3, window_bounds = array<i64: 8, 128>}]} {
    %c0_i32 = arith.constant 0 : i32
    %0 = arith.cmpi eq, %arg1, %c0_i32 : i32
    %1 = arith.extui %0 : i1 to i32
    %c0_i32_0 = arith.constant 0 : i32
    %2 = arith.cmpi ne, %1, %c0_i32_0 : i32
    scf.if %2 {
      %cst_10 = arith.constant 0.000000e+00 : f32
      %12 = vector.broadcast %cst_10 : f32 to vector<8x128xf32>
      %c0_11 = arith.constant 0 : index
      %c0_12 = arith.constant 0 : index
      %13 = vector.load %arg6[%c0_11, %c0_12] : memref<8x128xf32, #tpu.memory_space<vmem>>, vector<8x128xf32>
      tpu.vector_store %arg6[%c0_11, %c0_12], %12 {strides = array<i32>} : memref<8x128xf32, #tpu.memory_space<vmem>>, vector<8x128xf32>,
    } else {
    }
    %c0 = arith.constant 0 : index
    %c0_1 = arith.constant 0 : index
    %3 = vector.load %arg6[%c0, %c0_1] : memref<8x128xf32, #tpu.memory_space<vmem>>, vector<8x128xf32>
    %c0_2 = arith.constant 0 : index
    %c0_3 = arith.constant 0 : index
    %4 = vector.load %arg2[%c0_2, %c0_3] : memref<8x32xf32, #tpu.memory_space<vmem>>, vector<8x32xf32>
    %c0_4 = arith.constant 0 : index
    %c0_5 = arith.constant 0 : index
    %5 = vector.load %arg3[%c0_4, %c0_5] : memref<32x128xf32, #tpu.memory_space<vmem>>, vector<32x128xf32>
    %cst = arith.constant dense<0.000000e+00> : vector<8x128xf32>
    %6 = tpu.matmul %4, %5, %cst {dimension_numbers = #tpu.dot_dimension_numbers<[1], [0], [0], [1], [0, 0, 1, 1], [], []>} : vector<8x32xf32>, vector<32x128xf32>, vector<8x128xf32> -> vector<8x128xf32>
    %7 = arith.addf %3, %6 : vector<8x128xf32>
    %c0_6 = arith.constant 0 : index
    %c0_7 = arith.constant 0 : index
    %8 = vector.load %arg6[%c0_6, %c0_7] : memref<8x128xf32, #tpu.memory_space<vmem>>, vector<8x128xf32>
    tpu.vector_store %arg6[%c0_6, %c0_7], %7 {strides = array<i32>} : memref<8x128xf32, #tpu.memory_space<vmem>>, vector<8x128xf32>,
    %c0_i32_8 = arith.constant 0 : i32
    %9 = arith.cmpi eq, %arg1, %c0_i32_8 : i32
    %10 = arith.extui %9 : i1 to i32
    %c0_i32_9 = arith.constant 0 : i32
    %11 = arith.cmpi ne, %10, %c0_i32_9 : i32
    scf.if %11 {
      %c0_10 = arith.constant 0 : index
      %c0_11 = arith.constant 0 : index
      %12 = vector.load %arg6[%c0_10, %c0_11] : memref<8x128xf32, #tpu.memory_space<vmem>>, vector<8x128xf32>
      %c0_12 = arith.constant 0 : index
      %c0_13 = arith.constant 0 : index
      %13 = vector.load %arg4[%c0_12, %c0_13] : memref<1x128xf32, #tpu.memory_space<vmem>>, vector<1x128xf32>
      %14 = vector.broadcast %13 : vector<1x128xf32> to vector<8x128xf32>
      %15 = arith.addf %12, %14 : vector<8x128xf32>
      %c0_14 = arith.constant 0 : index
      %c0_15 = arith.constant 0 : index
      %16 = vector.load %arg5[%c0_14, %c0_15] : memref<8x128xf32, #tpu.memory_space<vmem>>, vector<8x128xf32>
      tpu.vector_store %arg5[%c0_14, %c0_15], %15 {strides = array<i32>} : memref<8x128xf32, #tpu.memory_space<vmem>>, vector<8x128xf32>,
    } else {
    }
    return
  }
  func.func @transform_0(%arg0: i32, %arg1: i32) -> (i32, i32) {
    %c0_i32 = arith.constant 0 : i32
    return %arg0, %arg1 : i32, i32
  }
  func.func @transform_1(%arg0: i32, %arg1: i32) -> (i32, i32) {
    %c0_i32 = arith.constant 0 : i32
    %c0_i32_0 = arith.constant 0 : i32
    return %arg1, %c0_i32 : i32, i32
  }
  func.func @transform_2(%arg0: i32, %arg1: i32) -> (i32, i32) {
    %c0_i32 = arith.constant 0 : i32
    %c0_i32_0 = arith.constant 0 : i32
    %c0_i32_1 = arith.constant 0 : i32
    return %c0_i32, %c0_i32_0 : i32, i32
  }
  func.func @transform_3(%arg0: i32, %arg1: i32) -> (i32, i32) {
    %c0_i32 = arith.constant 0 : i32
    %c0_i32_0 = arith.constant 0 : i32
    return %arg0, %c0_i32 : i32, i32
  }
}

module attributes {stable_mosaic.version = 11 : i64} {
  func.func @_affine_kernel(%arg0: i32, %arg1: i32, %arg2: memref<8x32xf32, #tpu.memory_space<vmem>>, %arg3: memref<32x128xf32, #tpu.memory_space<vmem>>, %arg4: memref<1x128xf32, #tpu.memory_space<vmem>>, %arg5: memref<8x128xf32, #tpu.memory_space<vmem>>, %arg6: memref<8x128xf32, #tpu.memory_space<vmem>>) attributes {dimension_semantics = [#tpu.dimension_semantics<parallel>, #tpu.dimension_semantics<arbitrary>], iteration_bounds = array<i64: 1, 1>, scalar_prefetch = 0 : i64, scratch_operands = 1 : i64, tpu.core_type = #tpu.core_type<tc>, window_params = [{transform_indices = @transform_0, window_bounds = array<i64: 8, 32>}, {transform_indices = @transform_1, window_bounds = array<i64: 32, 128>}, {pipeline_mode = #tpu.pipeline_mode<synchronous>, transform_indices = @transform_2, window_bounds = array<i64: 1, 128>}, {transform_indices = @transform_3, window_bounds = array<i64: 8, 128>}]} {
    %c0_i32 = arith.constant 0 : i32
    %0 = arith.cmpi eq, %arg1, %c0_i32 : i32
    %1 = arith.extui %0 : i1 to i32
    %c0_i32_0 = arith.constant 0 : i32
    %2 = arith.cmpi ne, %1, %c0_i32_0 : i32
    scf.if %2 {
      %cst_10 = arith.constant 0.000000e+00 : f32
      %12 = vector.broadcast %cst_10 : f32 to vector<8x128xf32>
      %c0_11 = arith.constant 0 : index
      %c0_12 = arith.constant 0 : index
      %13 = vector.load %arg6[%c0_11, %c0_12] : memref<8x128xf32, #tpu.memory_space<vmem>>, vector<8x128xf32>
      tpu.vector_store %arg6[%c0_11, %c0_12], %12 {strides = array<i32>} : memref<8x128xf32, #tpu.memory_space<vmem>>, vector<8x128xf32>,
    } else {
    }
    %c0 = arith.constant 0 : index
    %c0_1 = arith.constant 0 : index
    %3 = vector.load %arg6[%c0, %c0_1] : memref<8x128xf32, #tpu.memory_space<vmem>>, vector<8x128xf32>
    %c0_2 = arith.constant 0 : index
    %c0_3 = arith.constant 0 : index
    %4 = vector.load %arg2[%c0_2, %c0_3] : memref<8x32xf32, #tpu.memory_space<vmem>>, vector<8x32xf32>
    %c0_4 = arith.constant 0 : index
    %c0_5 = arith.constant 0 : index
    %5 = vector.load %arg3[%c0_4, %c0_5] : memref<32x128xf32, #tpu.memory_space<vmem>>, vector<32x128xf32>
    %cst = arith.constant dense<0.000000e+00> : vector<8x128xf32>
    %6 = tpu.matmul %4, %5, %cst {dimension_numbers = #tpu.dot_dimension_numbers<[1], [0], [0], [1], [0, 0, 1, 1], [], []>} : vector<8x32xf32>, vector<32x128xf32>, vector<8x128xf32> -> vector<8x128xf32>
    %7 = arith.addf %3, %6 : vector<8x128xf32>
    %c0_6 = arith.constant 0 : index
    %c0_7 = arith.constant 0 : index
    %8 = vector.load %arg6[%c0_6, %c0_7] : memref<8x128xf32, #tpu.memory_space<vmem>>, vector<8x128xf32>
    tpu.vector_store %arg6[%c0_6, %c0_7], %7 {strides = array<i32>} : memref<8x128xf32, #tpu.memory_space<vmem>>, vector<8x128xf32>,
    %c0_i32_8 = arith.constant 0 : i32
    %9 = arith.cmpi eq, %arg1, %c0_i32_8 : i32
    %10 = arith.extui %9 : i1 to i32
    %c0_i32_9 = arith.constant 0 : i32
    %11 = arith.cmpi ne, %10, %c0_i32_9 : i32
    scf.if %11 {
      %c0_10 = arith.constant 0 : index
      %c0_11 = arith.constant 0 : index
      %12 = vector.load %arg6[%c0_10, %c0_11] : memref<8x128xf32, #tpu.memory_space<vmem>>, vector<8x128xf32>
      %c0_12 = arith.constant 0 : index
      %c0_13 = arith.constant 0 : index
      %13 = vector.load %arg4[%c0_12, %c0_13] : memref<1x128xf32, #tpu.memory_space<vmem>>, vector<1x128xf32>
      %14 = vector.broadcast %13 : vector<1x128xf32> to vector<8x128xf32>
      %15 = arith.addf %12, %14 : vector<8x128xf32>
      %c0_14 = arith.constant 0 : index
      %c0_15 = arith.constant 0 : index
      %16 = vector.load %arg5[%c0_14, %c0_15] : memref<8x128xf32, #tpu.memory_space<vmem>>, vector<8x128xf32>
      tpu.vector_store %arg5[%c0_14, %c0_15], %15 {strides = array<i32>} : memref<8x128xf32, #tpu.memory_space<vmem>>, vector<8x128xf32>,
    } else {
    }
    return
  }
  func.func @transform_0(%arg0: i32, %arg1: i32) -> (i32, i32) {
    %c0_i32 = arith.constant 0 : i32
    return %arg0, %arg1 : i32, i32
  }
  func.func @transform_1(%arg0: i32, %arg1: i32) -> (i32, i32) {
    %c0_i32 = arith.constant 0 : i32
    %c0_i32_0 = arith.constant 0 : i32
    return %arg1, %c0_i32 : i32, i32
  }
  func.func @transform_2(%arg0: i32, %arg1: i32) -> (i32, i32) {
    %c0_i32 = arith.constant 0 : i32
    %c0_i32_0 = arith.constant 0 : i32
    %c0_i32_1 = arith.constant 0 : i32
    return %c0_i32, %c0_i32_0 : i32, i32
  }
  func.func @transform_3(%arg0: i32, %arg1: i32) -> (i32, i32) {
    %c0_i32 = arith.constant 0 : i32
    %c0_i32_0 = arith.constant 0 : i32
    return %arg0, %c0_i32 : i32, i32
  }
}

</mosaic_0001>

<bundles_post_ra>
// kernel: _fused_affine.1
= control target key start
LH: loop header
LB: loop body
LE: loop exit
PB: predicated region body
PF: predicated region fallthrough
CT: control target
= control target key end

     0   :  { %8 = vsyncpa [#allocation4], 0  ;;  %s287_s0 = inlined_call_operand.hbm [shape: f32[8,32], index: 0, kind: input, shape index: {}]   ;;  %s288_s1 = inlined_call_operand.hbm [shape: f32[32,128], index: 1, kind: input, shape index: {}]   ;;  %s289_s2 = inlined_call_operand.vmem [shape: f32[1,128], index: 2, kind: input, shape index: {}]   ;;  %s290_s3 = inlined_call_operand.hbm [shape: f32[8,128], index: 3, kind: output, shape index: {}]  }
   0x1   :  { %9 = vsyncpa [#allocation7], 0 }
   0x2   :  { %10 = vsyncpa [#allocation5], 0  ;;  %s248_s12 = smov [#allocation3]   ;;  %s249_s14 = smov [#allocation6]  }
   0x3   :  { %s17_s13 = sshll.u32 %s248_s12, 4  ;;  %s26_s15 = sshll.u32 %s249_s14, 4  ;;  %s18_s13 = int_to_ptr.vmem [resolvable:$true] %s17_s13  ;;  %s27_s15 = int_to_ptr.vmem [resolvable:$true] %s26_s15 }
   0x4   :  { %s190_s16 = scalar_lea.vmem %s18_s13, 128  ;;  %p195_p1 = scmp.lt.s32.totalorder %s18_s13, %s18_s13 }
   0x5   :  { %p191_p0 = scmp.ne.s32.totalorder %s18_s13, %s190_s16  ;;  %p196_p2 = scmp.lt.s32.totalorder %s190_s16, %s190_s16 }
   0x7   :  { %p197_p3 = por %p196_p2, %p195_p1 }
   0x9   :  { %p198_p4 = pnand %p197_p3, %p191_p0 }
   0xb   :  { %201 = shalt.err (!%p198_p4)
}
   0xc   :  { %20 = dma.hbm_to_vmem [thread:$0]  %s287_s0, 128, %s18_s13, [#allocation4]  }
   0xd   :  { %s210_s19 = scalar_lea.vmem %s27_s15, 512  ;;  %p215_p6 = scmp.lt.s32.totalorder %s27_s15, %s27_s15 }
   0xe   :  { %p211_p5 = scmp.ne.s32.totalorder %s27_s15, %s210_s19  ;;  %p216_p7 = scmp.lt.s32.totalorder %s210_s19, %s210_s19 }
  0x10   :  { %p217_p8 = por %p216_p7, %p215_p6 }
  0x12   :  { %p218_p9 = pnand %p217_p8, %p211_p5 }
  0x14   :  { %221 = shalt.err (!%p218_p9)
}
  0x15   :  { %s250_s20 = smov 128   ;;  %s251_s21 = smov 8  }
  0x16   :  { %32 = dma.hbm_to_vmem [thread:$0]  %s288_s1, 512, %s27_s15, [#allocation7], %s250_s20, %s250_s20, %s251_s21  }
  0x17   :  { %242 = dma.done.wait [#allocation4], 128  }
  0x18   :  { %243 = vsyncadd [#allocation4], 4294967168 }
  0x19   :  { %244 = dma.done.wait [#allocation7], 512  }
  0x1a   :  { %245 = vsyncadd [#allocation7], 4294966784  ;;  %v252_v0 = vmov 0.0   ;;  %vm253_vm0 = vmmov 0   ;;  %v51_v1 = vld [vmem:[#allocation6 + $0x18] sm:$0xff]  ;;  %v50_v2 = vld [vmem:[#allocation6 + $0x10] sm:$0xff] }
  0x1b   :  { %164 = vmatprep.subr.mxu0 %v252_v0  ;;  %172 = vmatprep.mubr.msk.f32.mxu0 %vm253_vm0, %v252_v0  ;;  %v49_v3 = vld [vmem:[#allocation6 + $0x8] sm:$0xff]  ;;  %v48_v4 = vld [vmem:[#allocation6] sm:$0xff]  ;;  %v47_v5 = vld [vmem:[#allocation3] sm:$0xff]  ;;  %vm52_vm1 = vcmask 261120   ;;  %s254_s24 = smov [#allocation8]  }
  0x1c   :  { %165 = vmatpush3.msra.mxu0 %v51_v1  ;;  %v158_v6 = vld [vmem:[%s289_s2] ss:$0 sm:$0xff]  ;;  %s147_s25 = sshll.u32 %s254_s24, 4  ;;  %s148_s25 = int_to_ptr.vmem [resolvable:$true] %s147_s25 }
  0x1d   :  { %166 = vmatprep.subr.mxu0 %v252_v0  ;;  %s222_s26 = scalar_lea.vmem %s148_s25, 128  ;;  %p227_p11 = scmp.lt.s32.totalorder %s148_s25, %s148_s25 }
  0x1e   :  { %167 = vmatpush3.msra.mxu0 %v50_v2  ;;  %p223_p10 = scmp.ne.s32.totalorder %s148_s25, %s222_s26  ;;  %p228_p12 = scmp.lt.s32.totalorder %s222_s26, %s222_s26 }
  0x1f   :  { %168 = vmatprep.subr.mxu0 %v252_v0 }
  0x20   :  { %169 = vmatpush3.msra.mxu0 %v49_v3  ;;  %p229_p13 = por %p228_p12, %p227_p11 }
  0x21   :  { %170 = vmatprep.subr.mxu0 %v252_v0 }
  0x22   :  { %171 = vmatpush3.msra.mxu0 %v48_v4  ;;  %p230_p0 = pnand %p229_p13, %p223_p10 }
  0x23   :  { %173 = vmatmul.mubr.msk.f32.vlgmr.msra.gmra.mxu0 %vm52_vm1, %v47_v5 }
  0xe3   :  { %v122_v7 = vpop.f32.mrf.mxu0 }
  0xe4   :  { %v139_v8 = vadd.f32 %v158_v6, %v122_v7 }
  0xe5   :  { %v174_v9 = vpop.f32.mrf.mxu0 }
  0xe6   :  { %140 = vst [vmem:[#allocation8] sm:$0xff] %v139_v8 }
  0xe7   :  { %233 = shalt.err (!%p230_p0)
}
  0xe8   :  { %150 = dma.vmem_to_hbm [thread:$0]  %s148_s25, 128, %s290_s3, [#allocation5]  }
  0xe9   :  { %246 = dma.done.wait [#allocation5], 128  }
  0xea   :  { %247 = vsyncadd [#allocation5], 4294967168 }
  0xeb   :  { %154 = vsyncpa [#allocation4], 1 }
  0xec   :  { %155 = vsyncpa [#allocation7], 1 }
  0xed   :  { %156 = vsyncpa [#allocation5], 1 }

// kernel: _fused_affine.1
= control target key start
LH: loop header
LB: loop body
LE: loop exit
PB: predicated region body
PF: predicated region fallthrough
CT: control target
= control target key end

     0   :  { %8 = vsyncpa [#allocation4], 0  ;;  %s287_s0 = inlined_call_operand.hbm [shape: f32[8,32], index: 0, kind: input, shape index: {}]   ;;  %s288_s1 = inlined_call_operand.hbm [shape: f32[32,128], index: 1, kind: input, shape index: {}]   ;;  %s289_s2 = inlined_call_operand.vmem [shape: f32[1,128], index: 2, kind: input, shape index: {}]   ;;  %s290_s3 = inlined_call_operand.hbm [shape: f32[8,128], index: 3, kind: output, shape index: {}]  }
   0x1   :  { %9 = vsyncpa [#allocation7], 0 }
   0x2   :  { %10 = vsyncpa [#allocation5], 0  ;;  %s248_s12 = smov [#allocation3]   ;;  %s249_s14 = smov [#allocation6]  }
   0x3   :  { %s17_s13 = sshll.u32 %s248_s12, 4  ;;  %s26_s15 = sshll.u32 %s249_s14, 4  ;;  %s18_s13 = int_to_ptr.vmem [resolvable:$true] %s17_s13  ;;  %s27_s15 = int_to_ptr.vmem [resolvable:$true] %s26_s15 }
   0x4   :  { %s190_s16 = scalar_lea.vmem %s18_s13, 128  ;;  %p195_p1 = scmp.lt.s32.totalorder %s18_s13, %s18_s13 }
   0x5   :  { %p191_p0 = scmp.ne.s32.totalorder %s18_s13, %s190_s16  ;;  %p196_p2 = scmp.lt.s32.totalorder %s190_s16, %s190_s16 }
   0x7   :  { %p197_p3 = por %p196_p2, %p195_p1 }
   0x9   :  { %p198_p4 = pnand %p197_p3, %p191_p0 }
   0xb   :  { %201 = shalt.err (!%p198_p4)
}
   0xc   :  { %20 = dma.hbm_to_vmem [thread:$0]  %s287_s0, 128, %s18_s13, [#allocation4]  }
   0xd   :  { %s210_s19 = scalar_lea.vmem %s27_s15, 512  ;;  %p215_p6 = scmp.lt.s32.totalorder %s27_s15, %s27_s15 }
   0xe   :  { %p211_p5 = scmp.ne.s32.totalorder %s27_s15, %s210_s19  ;;  %p216_p7 = scmp.lt.s32.totalorder %s210_s19, %s210_s19 }
  0x10   :  { %p217_p8 = por %p216_p7, %p215_p6 }
  0x12   :  { %p218_p9 = pnand %p217_p8, %p211_p5 }
  0x14   :  { %221 = shalt.err (!%p218_p9)
}
  0x15   :  { %s250_s20 = smov 128   ;;  %s251_s21 = smov 8  }
  0x16   :  { %32 = dma.hbm_to_vmem [thread:$0]  %s288_s1, 512, %s27_s15, [#allocation7], %s250_s20, %s250_s20, %s251_s21  }
  0x17   :  { %242 = dma.done.wait [#allocation4], 128  }
  0x18   :  { %243 = vsyncadd [#allocation4], 4294967168 }
  0x19   :  { %244 = dma.done.wait [#allocation7], 512  }
  0x1a   :  { %245 = vsyncadd [#allocation7], 4294966784  ;;  %v252_v0 = vmov 0.0   ;;  %vm253_vm0 = vmmov 0   ;;  %v51_v1 = vld [vmem:[#allocation6 + $0x18] sm:$0xff]  ;;  %v50_v2 = vld [vmem:[#allocation6 + $0x10] sm:$0xff] }
  0x1b   :  { %164 = vmatprep.subr.mxu0 %v252_v0  ;;  %172 = vmatprep.mubr.msk.f32.mxu0 %vm253_vm0, %v252_v0  ;;  %v49_v3 = vld [vmem:[#allocation6 + $0x8] sm:$0xff]  ;;  %v48_v4 = vld [vmem:[#allocation6] sm:$0xff]  ;;  %v47_v5 = vld [vmem:[#allocation3] sm:$0xff]  ;;  %vm52_vm1 = vcmask 261120   ;;  %s254_s24 = smov [#allocation8]  }
  0x1c   :  { %165 = vmatpush3.msra.mxu0 %v51_v1  ;;  %v158_v6 = vld [vmem:[%s289_s2] ss:$0 sm:$0xff]  ;;  %s147_s25 = sshll.u32 %s254_s24, 4  ;;  %s148_s25 = int_to_ptr.vmem [resolvable:$true] %s147_s25 }
  0x1d   :  { %166 = vmatprep.subr.mxu0 %v252_v0  ;;  %s222_s26 = scalar_lea.vmem %s148_s25, 128  ;;  %p227_p11 = scmp.lt.s32.totalorder %s148_s25, %s148_s25 }
  0x1e   :  { %167 = vmatpush3.msra.mxu0 %v50_v2  ;;  %p223_p10 = scmp.ne.s32.totalorder %s148_s25, %s222_s26  ;;  %p228_p12 = scmp.lt.s32.totalorder %s222_s26, %s222_s26 }
  0x1f   :  { %168 = vmatprep.subr.mxu0 %v252_v0 }
  0x20   :  { %169 = vmatpush3.msra.mxu0 %v49_v3  ;;  %p229_p13 = por %p228_p12, %p227_p11 }
  0x21   :  { %170 = vmatprep.subr.mxu0 %v252_v0 }
  0x22   :  { %171 = vmatpush3.msra.mxu0 %v48_v4  ;;  %p230_p0 = pnand %p229_p13, %p223_p10 }
  0x23   :  { %173 = vmatmul.mubr.msk.f32.vlgmr.msra.gmra.mxu0 %vm52_vm1, %v47_v5 }
  0xe3   :  { %v122_v7 = vpop.f32.mrf.mxu0 }
  0xe4   :  { %v139_v8 = vadd.f32 %v158_v6, %v122_v7 }
  0xe5   :  { %v174_v9 = vpop.f32.mrf.mxu0 }
  0xe6   :  { %140 = vst [vmem:[#allocation8] sm:$0xff] %v139_v8 }
  0xe7   :  { %233 = shalt.err (!%p230_p0)
}
  0xe8   :  { %150 = dma.vmem_to_hbm [thread:$0]  %s148_s25, 128, %s290_s3, [#allocation5]  }
  0xe9   :  { %246 = dma.done.wait [#allocation5], 128  }
  0xea   :  { %247 = vsyncadd [#allocation5], 4294967168 }
  0xeb   :  { %154 = vsyncpa [#allocation4], 1 }
  0xec   :  { %155 = vsyncpa [#allocation7], 1 }
  0xed   :  { %156 = vsyncpa [#allocation5], 1 }

</bundles_post_ra>
